<compile_context>
chip_gen: v7x
topology: tpu7x:2x2x1
jax: 0.10.0
libtpu: 0.0.40
codegen_flags: <defaults>
</compile_context>

<pallas_src>
import functools

import jax
import jax.numpy as jnp
from jax.experimental import pallas as pl
from jax.experimental.pallas import tpu as pltpu

K_IN = 28 * 28       # 784 (divisible by 8; used as a full-extent lane dim for x)
H = 80
H_PAD = 128          # lane-dense hidden width (zero padding -> mathematically exact)
C = 10


def _round_up(n, m):
    return ((n + m - 1) // m) * m


def _mnist_kernel(x_ref, w1_ref, b1_ref, w2_ref, b2_ref, o_ref):
    # x_ref:  (tb, 784) f32     w1_ref: (784, 128) bf16   b1_ref: (1, 128) f32
    # w2_ref: (128, 10) bf16    b2_ref: (1, 10)   f32     o_ref:  (tb, 10) f32
    x = x_ref[...].astype(jnp.bfloat16)        # bf16 MXU feed; cast happens in VMEM/vregs

    # fc1 (bf16 MXU, f32 accumulate) + bias + ReLU in f32.
    h = jnp.dot(x, w1_ref[...], preferred_element_type=jnp.float32)
    h = jnp.maximum(h + b1_ref[...], 0.0)

    # fc2 (bf16 MXU, f32 accumulate) + bias.  Only the 10 real classes exist here.
    logits = jnp.dot(h.astype(jnp.bfloat16), w2_ref[...],
                     preferred_element_type=jnp.float32) + b2_ref[...]

    # Numerically stable log_softmax over the 10 classes.
    m = jnp.max(logits, axis=-1, keepdims=True)
    shifted = logits - m
    lse = jnp.log(jnp.sum(jnp.exp(shifted), axis=-1, keepdims=True))
    o_ref[...] = (shifted - lse).astype(o_ref.dtype)


def _prepare_params(w1, b1, w2, b2):
    """Zero-pad hidden dim 80->128 (exact) and cast weight matrices to bf16."""
    w1p = jnp.zeros((K_IN, H_PAD), jnp.float32).at[:, :H].set(w1).astype(jnp.bfloat16)
    b1p = jnp.zeros((1, H_PAD), jnp.float32).at[:, :H].set(b1.reshape(1, H))
    w2p = jnp.zeros((H_PAD, C), jnp.float32).at[:H, :].set(w2).astype(jnp.bfloat16)
    b2p = b2.reshape(1, C).astype(jnp.float32)
    return w1p, b1p, w2p, b2p


@functools.partial(jax.jit, static_argnames=("tb",))
def mnist_forward(x, w1, b1, w2, b2, tb=None):
    """x: (B, 1, 28, 28) float32 -> log-probs (B, 10) float32.

    w1: (784, 80), b1: (1, 80), w2: (80, 10), b2: (1, 10)  (transposed nn.Linear).
    """
    B = x.shape[0]

    # Batch tile: multiple of 8 (f32 sublanes), capped at B.  Default ~1024 rows
    # amortizes the ~0.35us/grid-step overhead; x double-buffer at tb=1024 is ~6.2 MiB,
    # far inside the 32 MiB scoped VMEM on v5e/v6e/v7x.
    if tb is None:
        tb = 1024
    if B <= 8:
        tb = B                                   # single full-extent block
    else:
        tb = max(8, min(_round_up(tb, 8), (B // 8) * 8))
    grid = (pl.cdiv(B, tb),)

    # Flatten exactly like torch's x.view(-1, 784); this is a free view, no HBM copy.
    x2 = x.reshape(B, K_IN)

    w1p, b1p, w2p, b2p = _prepare_params(w1, b1, w2, b2)

    cost = pl.CostEstimate(
        flops=2 * B * (K_IN * H_PAD + H_PAD * C),
        transcendentals=B * (C + 1),
        bytes_accessed=(B * K_IN * 4                       # x (f32, read once)
                        + K_IN * H_PAD * 2 + H_PAD * C * 2  # weights (bf16)
                        + (H_PAD + C) * 4                   # biases (f32)
                        + B * C * 4),                       # output (f32)
    )

    out = pl.pallas_call(
        _mnist_kernel,
        out_shape=jax.ShapeDtypeStruct((B, C), jnp.float32),
        grid=grid,
        in_specs=[
            pl.BlockSpec((tb, K_IN), lambda i: (i, 0)),      # x tile (pipelined DMA)
            pl.BlockSpec((K_IN, H_PAD), lambda i: (0, 0)),   # weights: VMEM-resident
            pl.BlockSpec((1, H_PAD), lambda i: (0, 0)),
            pl.BlockSpec((H_PAD, C), lambda i: (0, 0)),
            pl.BlockSpec((1, C), lambda i: (0, 0)),
        ],
        out_specs=pl.BlockSpec((tb, C), lambda i: (i, 0)),
        compiler_params=pltpu.CompilerParams(
            dimension_semantics=("parallel",),   # 2 TCs on v7x; no-op on v5e/v6e
            vmem_limit_bytes=32 << 20,
        ),
        cost_estimate=cost,
    )(x2, w1p, b1p, w2p, b2p)

    return out


def init_params(key):
    """Deterministic synthetic parameters with nn.Linear shapes (transposed)."""
    k1, k2, k3, k4 = jax.random.split(key, 4)
    in1, out1 = K_IN, H
    in2, out2 = H, C
    # Uniform(-1/sqrt(fan_in), 1/sqrt(fan_in)) like torch's default Linear init.
    w1 = jax.random.uniform(k1, (in1, out1), jnp.float32,
                            -1.0 / jnp.sqrt(in1), 1.0 / jnp.sqrt(in1))
    b1 = jax.random.uniform(k2, (1, out1), jnp.float32,
                            -1.0 / jnp.sqrt(in1), 1.0 / jnp.sqrt(in1))
    w2 = jax.random.uniform(k3, (in2, out2), jnp.float32,
                            -1.0 / jnp.sqrt(in2), 1.0 / jnp.sqrt(in2))
    b2 = jax.random.uniform(k4, (1, out2), jnp.float32,
                            -1.0 / jnp.sqrt(in2), 1.0 / jnp.sqrt(in2))
    return w1, b1, w2, b2


def reference_forward(x, w1, b1, w2, b2):
    """Pure-JAX f32 reference (matches the PyTorch module)."""
    B = x.shape[0]
    x2 = x.reshape(B, K_IN)
    h = jnp.maximum(x2 @ w1 + b1, 0.0)
    logits = h @ w2 + b2
    return jax.nn.log_softmax(logits, axis=-1)


if __name__ == "__main__":
    key = jax.random.PRNGKey(0)
    kx, kp = jax.random.split(key)

    # B=20 with default tile (tb=16) exercises a 2-step grid including a partial
    # trailing block (rows 16..19 valid, OOB rows discarded by Pallas).
    B = 20
    x = jax.random.normal(kx, (B, 1, 28, 28), jnp.float32)
    w1, b1, w2, b2 = init_params(kp)

    out = jax.block_until_ready(mnist_forward(x, w1, b1, w2, b2))
    assert out.shape == (B, C)
    assert out.dtype == jnp.float32

    ref = reference_forward(x, w1, b1, w2, b2)
    # bf16 matmul inputs with f32 accumulation -> loosened tolerance vs f32 reference.
    max_err = float(jnp.max(jnp.abs(out - ref)))
    assert max_err < 5e-2, f"mismatch vs reference: max abs err {max_err}"
    # Rows must still be valid log-probabilities (f32 log_softmax -> tight).
    assert jnp.allclose(jnp.sum(jnp.exp(out), axis=-1), 1.0, atol=1e-3)

    print("KERNEL_OK")
</pallas_src>

<mosaic_0001>
module attributes {stable_mosaic.version = 11 : i64} {
  func.func @_mnist_kernel(%arg0: i32, %arg1: memref<16x784xf32, #tpu.memory_space<vmem>>, %arg2: memref<784x128xbf16, #tpu.memory_space<vmem>>, %arg3: memref<1x128xf32, #tpu.memory_space<vmem>>, %arg4: memref<128x10xbf16, #tpu.memory_space<vmem>>, %arg5: memref<1x10xf32, #tpu.memory_space<vmem>>, %arg6: memref<16x10xf32, #tpu.memory_space<vmem>>) attributes {dimension_semantics = [#tpu.dimension_semantics<parallel>], iteration_bounds = array<i64: 2>, scalar_prefetch = 0 : i64, scratch_operands = 0 : i64, tpu.core_type = #tpu.core_type<tc>, window_params = [{transform_indices = @transform_0, window_bounds = array<i64: 16, 784>}, {pipeline_mode = #tpu.pipeline_mode<synchronous>, transform_indices = @transform_1, window_bounds = array<i64: 784, 128>}, {pipeline_mode = #tpu.pipeline_mode<synchronous>, transform_indices = @transform_2, window_bounds = array<i64: 1, 128>}, {pipeline_mode = #tpu.pipeline_mode<synchronous>, transform_indices = @transform_3, window_bounds = array<i64: 128, 10>}, {pipeline_mode = #tpu.pipeline_mode<synchronous>, transform_indices = @transform_4, window_bounds = array<i64: 1, 10>}, {transform_indices = @transform_5, window_bounds = array<i64: 16, 10>}]} {
    %c0 = arith.constant 0 : index
    %c0_0 = arith.constant 0 : index
    %0 = vector.load %arg1[%c0, %c0_0] : memref<16x784xf32, #tpu.memory_space<vmem>>, vector<16x784xf32>
    %1 = arith.truncf %0 : vector<16x784xf32> to vector<16x784xbf16>
    %c0_1 = arith.constant 0 : index
    %c0_2 = arith.constant 0 : index
    %2 = vector.load %arg2[%c0_1, %c0_2] : memref<784x128xbf16, #tpu.memory_space<vmem>>, vector<784x128xbf16>
    %cst = arith.constant dense<0.000000e+00> : vector<16x128xf32>
    %3 = tpu.matmul %1, %2, %cst {dimension_numbers = #tpu.dot_dimension_numbers<[1], [0], [0], [1], [0, 0, 1, 1], [], []>} : vector<16x784xbf16>, vector<784x128xbf16>, vector<16x128xf32> -> vector<16x128xf32>
    %c0_3 = arith.constant 0 : index
    %c0_4 = arith.constant 0 : index
    %4 = vector.load %arg3[%c0_3, %c0_4] : memref<1x128xf32, #tpu.memory_space<vmem>>, vector<1x128xf32>
    %5 = vector.broadcast %4 : vector<1x128xf32> to vector<16x128xf32>
    %6 = arith.addf %3, %5 : vector<16x128xf32>
    %cst_5 = arith.constant 0.000000e+00 : f32
    %7 = vector.broadcast %cst_5 : f32 to vector<16x128xf32>
    %8 = arith.maximumf %6, %7 : vector<16x128xf32>
    %9 = arith.truncf %8 : vector<16x128xf32> to vector<16x128xbf16>
    %c0_6 = arith.constant 0 : index
    %c0_7 = arith.constant 0 : index
    %10 = vector.load %arg4[%c0_6, %c0_7] : memref<128x10xbf16, #tpu.memory_space<vmem>>, vector<128x10xbf16>
    %cst_8 = arith.constant dense<0.000000e+00> : vector<16x10xf32>
    %11 = tpu.matmul %9, %10, %cst_8 {dimension_numbers = #tpu.dot_dimension_numbers<[1], [0], [0], [1], [0, 0, 1, 1], [], []>} : vector<16x128xbf16>, vector<128x10xbf16>, vector<16x10xf32> -> vector<16x10xf32>
    %c0_9 = arith.constant 0 : index
    %c0_10 = arith.constant 0 : index
    %12 = vector.load %arg5[%c0_9, %c0_10] : memref<1x10xf32, #tpu.memory_space<vmem>>, vector<1x10xf32>
    %13 = vector.broadcast %12 : vector<1x10xf32> to vector<16x10xf32>
    %14 = arith.addf %11, %13 : vector<16x10xf32>
    %cst_11 = arith.constant dense<0xFF800000> : vector<16xf32>
    %15 = vector.multi_reduction <maximumf>, %14, %cst_11 [1] : vector<16x10xf32> to vector<16xf32>
    %16 = vector.shape_cast %15 : vector<16xf32> to vector<16x1xf32>
    %17 = vector.broadcast %16 : vector<16x1xf32> to vector<16x10xf32>
    %18 = arith.subf %14, %17 : vector<16x10xf32>
    %19 = math.exp %18 : vector<16x10xf32>
    %cst_12 = arith.constant dense<0.000000e+00> : vector<16xf32>
    %20 = vector.multi_reduction <add>, %19, %cst_12 [1] : vector<16x10xf32> to vector<16xf32>
    %21 = vector.shape_cast %20 : vector<16xf32> to vector<16x1xf32>
    %22 = math.log %21 : vector<16x1xf32>
    %23 = vector.broadcast %22 : vector<16x1xf32> to vector<16x10xf32>
    %24 = arith.subf %18, %23 : vector<16x10xf32>
    %c0_13 = arith.constant 0 : index
    %c0_14 = arith.constant 0 : index
    %25 = vector.load %arg6[%c0_13, %c0_14] : memref<16x10xf32, #tpu.memory_space<vmem>>, vector<16x10xf32>
    tpu.vector_store %arg6[%c0_13, %c0_14], %24 {strides = array<i32>} : memref<16x10xf32, #tpu.memory_space<vmem>>, vector<16x10xf32>,
    return
  }
  func.func @transform_0(%arg0: i32) -> (i32, i32) {
    %c0_i32 = arith.constant 0 : i32
    %c0_i32_0 = arith.constant 0 : i32
    return %arg0, %c0_i32 : i32, i32
  }
  func.func @transform_1(%arg0: i32) -> (i32, i32) {
    %c0_i32 = arith.constant 0 : i32
    %c0_i32_0 = arith.constant 0 : i32
    %c0_i32_1 = arith.constant 0 : i32
    return %c0_i32, %c0_i32_0 : i32, i32
  }
  func.func @transform_2(%arg0: i32) -> (i32, i32) {
    %c0_i32 = arith.constant 0 : i32
    %c0_i32_0 = arith.constant 0 : i32
    %c0_i32_1 = arith.constant 0 : i32
    return %c0_i32, %c0_i32_0 : i32, i32
  }
  func.func @transform_3(%arg0: i32) -> (i32, i32) {
    %c0_i32 = arith.constant 0 : i32
    %c0_i32_0 = arith.constant 0 : i32
    %c0_i32_1 = arith.constant 0 : i32
    return %c0_i32, %c0_i32_0 : i32, i32
  }
  func.func @transform_4(%arg0: i32) -> (i32, i32) {
    %c0_i32 = arith.constant 0 : i32
    %c0_i32_0 = arith.constant 0 : i32
    %c0_i32_1 = arith.constant 0 : i32
    return %c0_i32, %c0_i32_0 : i32, i32
  }
  func.func @transform_5(%arg0: i32) -> (i32, i32) {
    %c0_i32 = arith.constant 0 : i32
    %c0_i32_0 = arith.constant 0 : i32
    return %arg0, %c0_i32 : i32, i32
  }
}

</mosaic_0001>

<bundles_post_ra>
// kernel: mnist_forward.1
= control target key start
LH: loop header
LB: loop body
LE: loop exit
PB: predicated region body
PF: predicated region fallthrough
CT: control target
= control target key end

     0   :  { %s1670_s18 = smov 0   ;;  %s1672_s19 = smov 0   ;;  %s1965_s0 = inlined_call_operand.vmem [shape: f32[20,784], index: 0, kind: input, shape index: {}]   ;;  %s1966_s1 = inlined_call_operand.vmem [shape: bf16[784,128], index: 1, kind: input, shape index: {}]   ;;  %s1967_s2 = inlined_call_operand.vmem [shape: f32[1,128], index: 2, kind: input, shape index: {}]   ;;  %s1968_s3 = inlined_call_operand.vmem [shape: bf16[128,10], index: 3, kind: input, shape index: {}]   ;;  %s1969_s4 = inlined_call_operand.vmem [shape: f32[1,10], index: 4, kind: input, shape index: {}]   ;;  %s1970_s5 = inlined_call_operand.vmem [shape: f32[20,10], index: 5, kind: output, shape index: {}]  }
   0x1   :  { %s1674_s20 = smov 0  }
   0x2 LB: > { %s1683_s21 = sadd.s32 4294967295, %s1604_s20   ;;  %s1685_s22 = sadd.s32 1, %s1604_s20   ;;  %s1604_s20 = sphi %s1674_s20, %s1974_s20   ;;  %s1600_s19 = sphi %s1672_s19, %s1973_s19   ;;  %s1596_s18 = sphi %s1670_s18, %s1972_s18  }
   0x3   : > { %s129_s23 = ssub.s32 %s1604_s20, %s1685_s22  ;;  %s132_s24 = sadd.s32 1, %s1600_s19 }
   0x4   : > { %p130_p0 = scmp.eq.s32.totalorder %s129_s23, 0  ;;  %p142_p1 = scmp.ne.s32.totalorder %s1600_s19, %s1596_s18 }
   0x5   : > { %p143_p2 = scmp.eq.s32.totalorder %s1683_s21, 1  ;;  %p1207_p3 = scmp.ge.s32.totalorder %s1604_s20, 1 }
   0x6   : > { %s1693_s25 = scalar_select %p130_p0, %s1600_s19, %s132_s24  }
   0x7   : > { %p1695_p4 = por %p143_p2, %p142_p1  ;;  %p199_p5 = scmp.lt.s32.totalorder %s1604_s20, 3 }
   0x9   : > { %p200_p6 = pnand %p1207_p3, %p199_p5 }
   0xa   : > { %v1485_v0 = vld [vmem:[%s1966_s1 + $0x40] sm:$0xff] (!%p200_p6)   ;;  %v1489_v4 = vld [vmem:[%s1966_s1 + $0x48] sm:$0xff] (!%p200_p6)   ;;  %v1493_v8 = vld [vmem:[%s1966_s1 + $0x50] sm:$0xff] (!%p200_p6)   ;;  %s1742_s11 = sshll.u32 (!%p200_p6), %s1683_s21, 1  ;;  %v1638_v43 = vmov (!%p200_p6), 0.0   ;;  %vm1639_vm0 = vmmov (!%p200_p6), 0  }
   0xb   : > { %203 = sbr.rel (%p200_p6) target bundleno = 884 (0x374), region = 40  ;;  %v1486_v1 = vld [vmem:[%s1966_s1] sm:$0xff] (!%p200_p6)   ;;  %1291 = vmatprep.subr.bf16.mxu0 (!%p200_p6), %v1485_v0  ;;  %v1490_v5 = vld [vmem:[%s1966_s1 + $0x8] sm:$0xff] (!%p200_p6)   ;;  %v1494_v9 = vld [vmem:[%s1966_s1 + $0x10] sm:$0xff] (!%p200_p6)   ;;  %p238_p7 = scmp.lt.s32.totalorder (!%p200_p6), %s1742_s11, 2  ;;  %vm675_vm1 = vcmask (!%p200_p6), 130048  }
   0xc   : > { %v1487_v2 = vld [vmem:[%s1966_s1 + $0xc0] sm:$0xff] (!%p200_p6)   ;;  %1292 = vmatpush3.bf16.msra.mxu0 (!%p200_p6), %v1486_v1  ;;  %v1491_v6 = vld [vmem:[%s1966_s1 + $0xc8] sm:$0xff] (!%p200_p6)   ;;  %v1495_v10 = vld [vmem:[%s1966_s1 + $0xd0] sm:$0xff] (!%p200_p6)   ;;  %vm958_vm2 = vcmask (!%p200_p6), 80896   ;;  %s229_s23 = sand.u32 (!%p200_p6), 1, %s1596_s18  }
   0xd   : > { %v1488_v3 = vld [vmem:[%s1966_s1 + $0x80] sm:$0xff] (!%p200_p6)   ;;  %1313 = vmatprep.subr.bf16.mxu1 (!%p200_p6), %v1487_v2  ;;  %1293 = vmatprep.subr.bf16.mxu0 (!%p200_p6), %v1489_v4  ;;  %v1492_v7 = vld [vmem:[%s1966_s1 + $0x88] sm:$0xff] (!%p200_p6)   ;;  %v1496_v11 = vld [vmem:[%s1966_s1 + $0x90] sm:$0xff] (!%p200_p6)   ;;  %s1208_s24 = sshll.u32 (!%p200_p6), %s229_s23, 4 }
   0xe   : > { %1314 = vmatpush3.bf16.msra.mxu1 (!%p200_p6), %v1488_v3  ;;  %v1497_v12 = vld [vmem:[%s1966_s1 + $0x58] sm:$0xff] (!%p200_p6)   ;;  %v1501_v16 = vld [vmem:[%s1966_s1 + $0x60] sm:$0xff] (!%p200_p6)   ;;  %v1505_v20 = vld [vmem:[%s1966_s1 + $0x68] sm:$0xff] (!%p200_p6)   ;;  %s1918_s27 = scalar_lea.vmem (!%p200_p6), [#allocation2], %s1208_s24  }
   0xf   : > { %1315 = vmatprep.subr.bf16.mxu1 (!%p200_p6), %v1491_v6  ;;  %v1498_v13 = vld [vmem:[%s1966_s1 + $0x18] sm:$0xff] (!%p200_p6)   ;;  %v1502_v17 = vld [vmem:[%s1966_s1 + $0x20] sm:$0xff] (!%p200_p6)   ;;  %v1506_v21 = vld [vmem:[%s1966_s1 + $0x28] sm:$0xff] (!%p200_p6)  }
  0x10   : > { %1294 = vmatpush3.bf16.msra.mxu0 (!%p200_p6), %v1490_v5  ;;  %v1499_v14 = vld [vmem:[%s1966_s1 + $0xd8] sm:$0xff] (!%p200_p6)   ;;  %v1503_v18 = vld [vmem:[%s1966_s1 + $0xe0] sm:$0xff] (!%p200_p6)   ;;  %v1507_v22 = vld [vmem:[%s1966_s1 + $0xe8] sm:$0xff] (!%p200_p6)  }
  0x11   : > { %1295 = vmatprep.subr.bf16.mxu0 (!%p200_p6), %v1493_v8  ;;  %v1500_v15 = vld [vmem:[%s1966_s1 + $0x98] sm:$0xff] (!%p200_p6)   ;;  %v1504_v19 = vld [vmem:[%s1966_s1 + $0xa0] sm:$0xff] (!%p200_p6)   ;;  %v1508_v23 = vld [vmem:[%s1966_s1 + $0xa8] sm:$0xff] (!%p200_p6)  }
  0x12   : > { %1316 = vmatpush3.bf16.msra.mxu1 %v1492_v7  ;;  %s239_s7 = scalar_select %p238_p7, %s1742_s11, 2  ;;  %v1509_v24 = vld [vmem:[%s1966_s1 + $0x70] sm:$0xff]   ;;  %v1513_v28 = vld [vmem:[%s1966_s1 + $0x78] sm:$0xff]   ;;  %v1517_v38 = vld [vmem:[%s1966_s1 + $0x140] sm:$0xff]  }
  0x13   : > { %1317 = vmatprep.subr.bf16.mxu1 %v1495_v10  ;;  %v1510_v25 = vld [vmem:[%s1966_s1 + $0x30] sm:$0xff]   ;;  %v1514_v29 = vld [vmem:[%s1966_s1 + $0x38] sm:$0xff]   ;;  %v1518_v42 = vld [vmem:[%s1966_s1 + $0x100] sm:$0xff]   ;;  %s993_s18 = ssub.s32 (%p1695_p4), 3, %s1742_s11  ;;  %s1288_s28 = sshll.u32 (%p1695_p4), %s1683_s21, 4 }
  0x14   : > { %1296 = vmatpush3.bf16.msra.mxu0 %v1494_v9  ;;  %s1394_s17 = smul.u32 56, %s239_s7  ;;  %v1511_v26 = vld [vmem:[%s1966_s1 + $0xf0] sm:$0xff]   ;;  %v1515_v30 = vld [vmem:[%s1966_s1 + $0xf8] sm:$0xff]   ;;  %v1519_v47 = vld [vmem:[%s1966_s1 + $0x148] sm:$0xff]   ;;  %p994_p8 = scmp.lt.s32.totalorder (%p1695_p4), %s993_s18, 2 }
  0x15   : > { %1297 = vmatprep.subr.bf16.mxu0 %v1497_v12  ;;  %v1512_v27 = vld [vmem:[%s1966_s1 + $0xb0] sm:$0xff]   ;;  %v1516_v34 = vld [vmem:[%s1966_s1 + $0xb8] sm:$0xff]   ;;  %v1520_v48 = vld [vmem:[%s1966_s1 + $0x108] sm:$0xff]   ;;  %s1931_s30 = scalar_lea.vmem (%p1695_p4), %s1970_s5, %s1288_s28  }
  0x16   : > { %1318 = vmatpush3.bf16.msra.mxu1 %v1496_v11  ;;  %s1794_s9 = scalar_lea.vmem %s1965_s0, %s1394_s17  ;;  %v1521_v49 = vld [vmem:[%s1966_s1 + $0x150] sm:$0xff]   ;;  %v1523_v51 = vld [vmem:[%s1966_s1 + $0x158] sm:$0xff]   ;;  %v1525_v53 = vld [vmem:[%s1966_s1 + $0x160] sm:$0xff]  }
  0x17   : > { %1319 = vmatprep.subr.bf16.mxu1 %v1499_v14  ;;  %v256_v31 = vld [vmem:[%s1794_s9 + $0x8] sm:$0xff]  ;;  %v263_v32 = vld [vmem:[%s1794_s9 + $0x40] sm:$0xff]  ;;  %v262_v36 = vld [vmem:[%s1794_s9 + $0x38] sm:$0xff] }
  0x18   : > { %1298 = vmatpush3.bf16.msra.mxu0 %v1498_v13  ;;  %v270_v33 = vpack.c.bf16 %v263_v32, %v256_v31  ;;  %v255_v35 = vld [vmem:[%s1794_s9] sm:$0xff]  ;;  %v258_v39 = vld [vmem:[%s1794_s9 + $0x18] sm:$0xff]  ;;  %v265_v40 = vld [vmem:[%s1794_s9 + $0x50] sm:$0xff] }
  0x19   : > { %1299 = vmatprep.subr.bf16.mxu0 %v1501_v16  ;;  %v269_v37 = vpack.c.bf16 %v262_v36, %v255_v35  ;;  %v272_v41 = vpack.c.bf16 %v265_v40, %v258_v39  ;;  %v257_v44 = vld [vmem:[%s1794_s9 + $0x10] sm:$0xff]  ;;  %v264_v45 = vld [vmem:[%s1794_s9 + $0x48] sm:$0xff]  ;;  %v1524_v52 = vld [vmem:[%s1966_s1 + $0x118] sm:$0xff]  }
  0x1a   : > { %1320 = vmatpush3.bf16.msra.mxu1 %v1500_v15  ;;  %711 = vmatprep.mubr.bf16.mxu0 %v270_v33  ;;  %v271_v46 = vpack.c.bf16 %v264_v45, %v257_v44  ;;  %v1522_v50 = vld [vmem:[%s1966_s1 + $0x110] sm:$0xff]   ;;  %v1526_v54 = vld [vmem:[%s1966_s1 + $0x120] sm:$0xff]   ;;  %v1527_v55 = vld [vmem:[%s1966_s1 + $0x168] sm:$0xff]  }
  0x1b   : > { %1321 = vmatprep.subr.bf16.mxu1 %v1503_v18  ;;  %752 = vmatprep.mubr.bf16.mxu1 %v272_v41  ;;  %v1533_v56 = vld [vmem:[%s1966_s1 + $0x180] sm:$0xff]   ;;  %v260_v57 = vld [vmem:[%s1794_s9 + $0x28] sm:$0xff]  ;;  %v1529_v59 = vld [vmem:[%s1966_s1 + $0x170] sm:$0xff]  }
  0x1c   : > { %1300 = vmatpush3.bf16.msra.mxu0 %v1502_v17  ;;  %v1528_v58 = vld [vmem:[%s1966_s1 + $0x128] sm:$0xff]   ;;  %v267_v60 = vld [vmem:[%s1794_s9 + $0x60] sm:$0xff]  ;;  %v261_v62 = vld [vmem:[%s1794_s9 + $0x30] sm:$0xff] }
  0x1d   : > { %1301 = vmatprep.subr.bf16.mxu0 %v1505_v20  ;;  %v274_v61 = vpack.c.bf16 %v267_v60, %v260_v57  ;;  %v268_v63 = vld [vmem:[%s1794_s9 + $0x68] sm:$0xff]  ;;  %v1530_v1 = vld [vmem:[%s1966_s1 + $0x130] sm:$0xff]   ;;  %v1531_v2 = vld [vmem:[%s1966_s1 + $0x178] sm:$0xff]  }
  0x1e   : > { %1322 = vmatpush3.bf16.msra.mxu1 %v1504_v19  ;;  %v275_v0 = vpack.c.bf16 %v268_v63, %v261_v62  ;;  %v1532_v3 = vld [vmem:[%s1966_s1 + $0x138] sm:$0xff]   ;;  %v259_v4 = vld [vmem:[%s1794_s9 + $0x20] sm:$0xff]  ;;  %v1535_v8 = vld [vmem:[%s1968_s3 + $0x8] sm:$0xff]  }
  0x1f   : > { %1323 = vmatprep.subr.bf16.mxu1 %v1507_v22  ;;  %v266_v5 = vld [vmem:[%s1794_s9 + $0x58] sm:$0xff]  ;;  %v1534_v7 = vld [vmem:[%s1968_s3] sm:$0xff]   ;;  %v1536_v9 = vld [vmem:[%s1968_s3 + $0x10] sm:$0xff]  }
  0x20   : > { %1302 = vmatpush3.bf16.msra.mxu0 %v1506_v21  ;;  %v273_v6 = vpack.c.bf16 %v266_v5, %v259_v4  ;;  %v1537_v10 = vld [vmem:[%s1968_s3 + $0x18] sm:$0xff]   ;;  %v1538_v11 = vld [vmem:[%s1968_s3 + $0x20] sm:$0xff]   ;;  %v1539_v12 = vld [vmem:[%s1968_s3 + $0x28] sm:$0xff]  }
  0x21   : > { %1303 = vmatprep.subr.bf16.mxu0 %v1509_v24  ;;  %v1540_v13 = vld [vmem:[%s1968_s3 + $0x30] sm:$0xff]   ;;  %v1541_v14 = vld [vmem:[%s1968_s3 + $0x38] sm:$0xff]   ;;  %v1211_v16 = vld [vmem:[%s1967_s2] ss:$0 sm:$0xff] }
  0x22   : > { %1324 = vmatpush3.bf16.msra.mxu1 %v1508_v23 }
  0x23   : > { %1325 = vmatprep.subr.bf16.mxu1 %v1511_v26 }
  0x24   : > { %1304 = vmatpush3.bf16.msra.mxu0 %v1510_v25 }
  0x25   : > { %1305 = vmatprep.subr.bf16.mxu0 %v1513_v28 }
  0x26   : > { %1326 = vmatpush3.bf16.msra.mxu1 %v1512_v27 }
  0x27   : > { %1327 = vmatprep.subr.bf16.mxu1 %v1515_v30 }
  0x28   : > { %1306 = vmatpush3.bf16.msra.mxu0 %v1514_v29 }
  0x29   : > { %1335 = vmatprep.subr.bf16.mxu0 %v1517_v38 }
  0x2a   : > { %1328 = vmatpush3.bf16.msra.mxu1 %v1516_v34 }
  0x2b   : > { %1368 = vmatprep.subr.bf16.mxu1 %v1638_v43  ;;  %712 = vmatmul.mubr.bf16.vlgmr.msra.gmra.mrb[0].mxu0 %v269_v37 }
  0x2c   : > { %1336 = vmatpush3.bf16.msra.mxu0 %v1518_v42  ;;  %793 = vmatprep.mubr.bf16.mxu0 %v274_v61 }
  0x2d   : > { %753 = vmatmul.mubr.bf16.vlgmr.msra.gmra.mrb[0].mxu1 %v271_v46  ;;  %1337 = vmatprep.subr.bf16.mxu0 %v1519_v47 }
  0x2e   : > { %1370 = vmatprep.mubr.msk.bf16.mxu1 %vm1639_vm0, %v1638_v43  ;;  %1369 = vmatpush3.bf16.msra.mxu1 %v1533_v56 }
  0x2f   : > { %1374 = vmatprep.subr.bf16.mxu1 %v1638_v43 }
  0x30   : > { %1338 = vmatpush3.bf16.msra.mxu0 %v1520_v48 }
  0x31   : > { %1339 = vmatprep.subr.bf16.mxu0 %v1521_v49  ;;  %v1262_v49 = vld [vmem:[%s1969_s4] ss:$0 sm:$0xff] }
  0x34   : > { %1340 = vmatpush3.bf16.msra.mxu0 %v1522_v50 }
  0x35   : > { %1341 = vmatprep.subr.bf16.mxu0 %v1523_v51  ;;  %1371 = vmatmul.mubr.msk.bf16.vlgmr.msra.gmra.mrb[4].mxu1 %vm675_vm1, %v275_v0 }
  0x36   : > { %1390 = vmatprep.mubr.msk.bf16.mxu1 %vm1639_vm0, %v1638_v43  ;;  %1375 = vmatpush3.bf16.msra.mxu1 %v1534_v7 }
  0x37   : > { %1376 = vmatprep.subr.bf16.mxu1 %v1638_v43 }
  0x38   : > { %1342 = vmatpush3.bf16.msra.mxu0 %v1524_v52 }
  0x39   : > { %1343 = vmatprep.subr.bf16.mxu0 %v1525_v53 }
  0x3a   : > { %1377 = vmatpush3.bf16.msra.mxu1 %v1535_v8 }
  0x3b   : > { %1378 = vmatprep.subr.bf16.mxu1 %v1638_v43 }
  0x3c   : > { %1344 = vmatpush3.bf16.msra.mxu0 %v1526_v54 }
  0x3d   : > { %1345 = vmatprep.subr.bf16.mxu0 %v1527_v55 }
  0x3e   : > { %1379 = vmatpush3.bf16.msra.mxu1 %v1536_v9 }
  0x3f   : > { %1380 = vmatprep.subr.bf16.mxu1 %v1638_v43 }
  0x40   : > { %1346 = vmatpush3.bf16.msra.mxu0 %v1528_v58 }
  0x41   : > { %1347 = vmatprep.subr.bf16.mxu0 %v1529_v59 }
  0x42   : > { %1381 = vmatpush3.bf16.msra.mxu1 %v1537_v10 }
  0x43   : > { %1382 = vmatprep.subr.bf16.mxu1 %v1638_v43 }
  0x44   : > { %1348 = vmatpush3.bf16.msra.mxu0 %v1530_v1 }
  0x45   : > { %1349 = vmatprep.subr.bf16.mxu0 %v1531_v2 }
  0x46   : > { %1383 = vmatpush3.bf16.msra.mxu1 %v1538_v11 }
  0x47   : > { %1384 = vmatprep.subr.bf16.mxu1 %v1638_v43 }
  0x48   : > { %1350 = vmatpush3.bf16.msra.mxu0 %v1532_v3 }
  0x4a   : > { %1385 = vmatpush3.bf16.msra.mxu1 %v1539_v12 }
  0x4b   : > { %794 = vmatmul.mubr.bf16.vlgmr.msra.gmra.mrb[4].mxu0 %v273_v6  ;;  %1386 = vmatprep.subr.bf16.mxu1 %v1638_v43 }
  0x4e   : > { %1387 = vmatpush3.bf16.msra.mxu1 %v1540_v13 }
  0x4f   : > { %1388 = vmatprep.subr.bf16.mxu1 %v1638_v43 }
  0x52   : > { %1389 = vmatpush3.bf16.msra.mxu1 %v1541_v14 }
  0xfe   : > { %v1307_v15 = vpop.f32.mrb[0].mxu0 }
  0xff   : > { %v1308_v17 = vpop.f32.mrb[1].mxu0 }
 0x100   : > { %v1309_v18 = vadd.f32 %v1308_v17, %v1307_v15  ;;  %v1310_v19 = vpop.f32.mrb[2].mxu0  ;;  %v1329_v20 = vpop.f32.mrb[0].mxu1 }
 0x101   : > { %v1311_v21 = vpop.f32.mrb[3].mxu0  ;;  %v1330_v24 = vpop.f32.mrb[1].mxu1 }
 0x102   : > { %v714_v22 = vadd.f32 %v1309_v18, %v1211_v16  ;;  %v1312_v23 = vadd.f32 %v1311_v21, %v1310_v19  ;;  %v1331_v25 = vadd.f32 %v1330_v24, %v1329_v20  ;;  %v1332_v26 = vpop.f32.mrb[2].mxu1 }
 0x103   : > { %v1333_v28 = vpop.f32.mrb[3].mxu1 }
 0x104   : > { %v717_v27 = vadd.f32 %v1312_v23, %v1211_v16  ;;  %v755_v29 = vadd.f32 %v1331_v25, %v714_v22  ;;  %v1334_v30 = vadd.f32 %v1333_v28, %v1332_v26 }
 0x106   : > { %v758_v31 = vadd.f32 %v1334_v30, %v717_v27 }
 0x108   : > { %v836_v32 = vpop.f32.mrb[4].mxu1 }
 0x109   : > { %v1372_v33 = vpop.f32.mrb[5].mxu1 }
 0x10a   : > { %v839_v34 = vpop.f32.mrb[6].mxu1 }
 0x10b   : > { %v1373_v35 = vpop.f32.mrb[7].mxu1 }
 0x11e   : > { %v1351_v36 = vpop.f32.mrb[4].mxu0 }
 0x11f   : > { %v1352_v37 = vpop.f32.mrb[5].mxu0 }
 0x120   : > { %v1353_v38 = vadd.f32 %v1352_v37, %v1351_v36  ;;  %v1354_v39 = vpop.f32.mrb[6].mxu0 }
 0x121   : > { %v1355_v40 = vpop.f32.mrb[7].mxu0 }
 0x122   : > { %v796_v41 = vadd.f32 %v1353_v38, %v755_v29  ;;  %v1356_v42 = vadd.f32 %v1355_v40, %v1354_v39 }
 0x124   : > { %v837_v43 = vadd.f32 %v836_v32, %v796_v41  ;;  %v799_v44 = vadd.f32 %v1356_v42, %v758_v31 }
 0x126   : > { %v840_v45 = vadd.f32 %v839_v34, %v799_v44  ;;  %v843_v46 = vmax.f32 %v837_v43, 0.0 }
 0x128   : > { %v844_v47 = vmax.f32 %v840_v45, 0.0 }
 0x12a   : > { %v845_v48 = vpack.c.bf16 %v844_v47, %v843_v46 }
 0x12c   : > { %1391 = vmatmul.mubr.bf16.vlgmr.msra.gmra.mrb[8].mxu1 %v845_v48 }
 0x1ff   : > { %v951_v50 = vpop.f32.mrb[8].mxu1 }
 0x200   : > { %v952_v51 = vadd.f32 %v1262_v49, %v951_v50  ;;  %v1392_v52 = vpop.f32.mrb[9].mxu1 }
 0x201   : > { %v954_v53 = vpop.f32.mrb[10].mxu1 }
 0x202   : > { %v955_v54 = vadd.f32 %v1262_v49, %v954_v53  ;;  %v1393_v55 = vpop.f32.mrb[11].mxu1  ;;  %v959_v56 = vsel %vm958_vm2, %v952_v51, -inf }
 0x203   : > { %960 = vmax.xlane.f32.xlu0 %v959_v56 }
 0x204   : > { %v962_v57 = vsel %vm958_vm2, %v955_v54, -inf }
 0x207   : > { %963 = vmax.xlane.f32.xlu0 %v962_v57 }
 0x290   : > { %v961_v58 = vpop.xlane.xlu0 %960 }
 0x291   : > { %v965_v59 = vsub.f32 %v952_v51, %v961_v58 }
 0x293   : > { %v967_v60 = vmul.f32 1.442695, %v965_v59 }
 0x294   : > { %v964_v61 = vpop.xlane.xlu0 %963 }
 0x295   : > { %1542 = vpow2.f32 %v967_v60  ;;  %v966_v62 = vsub.f32 %v955_v54, %v964_v61 }
 0x297   : > { %v969_v63 = vmul.f32 1.442695, %v966_v62 }
 0x299   : > { %1544 = vpow2.f32 %v969_v63 }
 0x29f   : > { %v1543_v0 = vpop.eup %1542 }
 0x2a0   : > { %v971_v1 = vsel %vm958_vm2, %v1543_v0, 0.0 }
 0x2a1   : > { %972 = vadd.xlane.f32.xlu1 %v971_v1 }
 0x2a3   : > { %v1545_v2 = vpop.eup %1544 }
 0x2a4   : > { %v974_v3 = vsel %vm958_vm2, %v1545_v2, 0.0 }
 0x2a5   : > { %975 = vadd.xlane.f32.xlu1 %v974_v3 }
 0x32e   : > { %v973_v4 = vpop.xlane.xlu1 %972 }
 0x32f   : > { %1546 = vlog2.f32 %v973_v4 }
 0x332   : > { %v976_v5 = vpop.xlane.xlu1 %975 }
 0x333   : > { %1548 = vlog2.f32 %v976_v5 }
 0x339   : > { %v1547_v6 = vpop.eup %1546 }
 0x33a   : > { %v978_v7 = vmul.f32 0.6931472, %v1547_v6 }
 0x33c   : > { %v981_v8 = vsub.f32 %v965_v59, %v978_v7  ;;  %991 = sbr.rel (!%p1695_p4) target bundleno = 884 (0x374), region = 44 }
 0x33d   : > { %v1549_v9 = vpop.eup %1548 }
 0x33e   : > { %983 = vst.msk [vmem:[%s1918_s27] sm:$0xff] %vm958_vm2, %v981_v8  ;;  %v980_v10 = vmul.f32 0.6931472, %v1549_v9 }
 0x340   : > { %v982_v11 = vsub.f32 %v966_v62, %v980_v10 }
 0x342   : > { %984 = vst.msk [vmem:[%s1918_s27 + $0x8] sm:$0xff] %vm958_vm2, %v982_v11 }
 0x343   : > { %s1976_s18 = smov (!%p994_p8, %s993_s18), 2 }
 0x344   : > { %s1273_s6 = sshll.u32 %s1976_s18, 7 }
 0x345   : > { %p1276_p9 = scmp.eq.s32.totalorder %s1273_s6, 0 }
 0x346   : > { %s1937_s7 = sshrl.u32 (!%p1276_p9), %s1976_s18, 1 }
 0x347   : > { %1002 = sbr.rel (%p1276_p9) target bundleno = 884 (0x374), region = 48  ;;  %p1277_p10 = scmp.le.s32.totalorder (!%p1276_p9), %s1937_s7, 0 }
 0x34e   : > { %1160 = sbr.rel (%p1277_p10) target bundleno = 863 (0x35f), region = 124  ;;  %s1606_s21 = smov (!%p1277_p10), %s1931_s30  }
 0x34f   : > { %s1610_s26 = smov (!%p1277_p10), %s1918_s27   ;;  %s1614_s11 = smov (!%p1277_p10), 0  }
 0x350   : > { %s1618_s8 = smov (!%p1277_p10), 0  }
 0x355 LB: >> { %v1066_v12 = vld [vmem:[%s1612_s26] sm:$0xff]  ;;  %v1068_v13 = vld [vmem:[%s1612_s26 + $0x8] sm:$0xff]  ;;  %s1070_s10 = sadd.s32 1, %s1616_s11  ;;  %s1060_s8 = sadd.s32 1, %s1620_s8   ;;  %s1620_s8 = sphi %s1618_s8, %s1060_s8   ;;  %s1616_s11 = sphi %s1614_s11, %s1615_s11   ;;  %s1612_s26 = sphi %s1610_s26, %s1075_s26   ;;  %s1608_s21 = sphi %s1606_s21, %s1076_s21  }
 0x356   : >> { %1067 = vst [vmem:[%s1608_s21] sm:$0xff] %v1066_v12  ;;  %1069 = vst [vmem:[%s1608_s21 + $0x8] sm:$0xff] %v1068_v13  ;;  %p1071_p11 = scmp.ge.s32.totalorder %s1070_s10, %s1937_s7  ;;  %p1059_p12 = scmp.ge.s32.totalorder %s1060_s8, %s1937_s7 }
 0x358   : >> { %s1978_s10 = smov (%p1071_p11, %s1070_s10), 0  ;;  %1062 = sbr.rel (!%p1059_p12) target bundleno = 853 (0x355), region = 130 }
 0x359   : >> { %s1278_s12 = sshll.u32 %s1978_s10, 4  ;;  %s1615_s11 = smov %s1978_s10  }
 0x35a   : >> { %s1075_s26 = scalar_lea.vmem %s1918_s27, %s1278_s12 [#allocation2]   ;;  %s1076_s21 = scalar_lea.vmem %s1931_s30, %s1278_s12  }
 0x35f PF: > { %s1947_s13 = sand.u32 1, %s1976_s18   ;;  %s1289_s14 = sshll.u32 %s1937_s7, 4 }
 0x360   : > { %s1081_s15 = scalar_lea.vmem %s1918_s27, %s1289_s14 [#allocation2]   ;;  %s1083_s16 = scalar_lea.vmem %s1931_s30, %s1289_s14  }
 0x361   : > { %p1283_p13 = scmp.le.s32.totalorder %s1947_s13, 0 }
 0x362   : > { %s1622_s17 = smov (!%p1283_p13), %s1083_s16   ;;  %s1626_s20 = smov (!%p1283_p13), %s1081_s15  }
 0x363   : > { %1174 = sbr.rel (%p1283_p13) target bundleno = 884 (0x374), region = 135  ;;  %s1630_s23 = smov (!%p1283_p13), 0  }
 0x364   : > { %s1634_s24 = smov (!%p1283_p13), 0  }
 0x36a LB: >> { %v1093_v14 = vld [vmem:[%s1628_s20] sm:$0xff]  ;;  %s1095_s18 = sadd.s32 1, %s1632_s23  ;;  %s1087_s24 = sadd.s32 1, %s1636_s24   ;;  %s1636_s24 = sphi %s1634_s24, %s1087_s24   ;;  %s1632_s23 = sphi %s1630_s23, %s1631_s23   ;;  %s1628_s20 = sphi %s1626_s20, %s1100_s20   ;;  %s1624_s17 = sphi %s1622_s17, %s1101_s17  }
 0x36b   : >> { %1094 = vst [vmem:[%s1624_s17] sm:$0xff] %v1093_v14  ;;  %p1096_p0 = scmp.ge.s32.totalorder %s1095_s18, %s1947_s13  ;;  %p1086_p1 = scmp.ge.s32.totalorder %s1087_s24, %s1947_s13 }
 0x36d   : >> { %s1980_s18 = smov (%p1096_p0, %s1095_s18), 0  ;;  %1089 = sbr.rel (!%p1086_p1) target bundleno = 874 (0x36a), region = 141 }
 0x36e   : >> { %s1284_s27 = sshll.u32 %s1980_s18, 3  ;;  %s1631_s23 = smov %s1980_s18  }
 0x36f   : >> { %s1100_s20 = scalar_lea.vmem %s1081_s15, %s1284_s27 [#allocation2]   ;;  %s1101_s17 = scalar_lea.vmem %s1083_s16, %s1284_s27  }
 0x374 PF: > { %p12_p2 = scmp.ge.s32.totalorder %s1685_s22, 4   ;;  %s1972_s18 = smov %s1600_s19 }
 0x375   : > { %s1973_s19 = smov %s1693_s25  ;;  %s1974_s20 = smov %s1685_s22 }
 0x376   :  { %14 = sbr.rel (!%p12_p2) target bundleno = 2 (0x2), region = 152 }

</bundles_post_ra>
